<compile_context>
chip_gen: v7x
topology: tpu7x:2x2x1
jax: 0.10.0
libtpu: 0.0.40
codegen_flags: <defaults>
</compile_context>

<pallas_src>
import jax
import jax.numpy as jnp
from jax.experimental import pallas as pl
from jax.experimental.pallas import tpu as pltpu

IN_F, H1_F, H2_F, OUT_F = 784, 128, 64, 10


def _mlp_kernel(x_ref, w1_ref, b1_ref, w2_ref, b2_ref, w3_ref, b3_ref, o_ref):
    # fc1: bf16 x bf16 on the MXU, f32 accumulate; bias + relu in f32.
    h1 = jnp.dot(x_ref[...], w1_ref[...], preferred_element_type=jnp.float32)
    h1 = jnp.maximum(h1 + b1_ref[...], 0.0)
    # fc2 + relu (bf16 MXU inputs, f32 accumulate / elementwise)
    h2 = jnp.dot(h1.astype(jnp.bfloat16), w2_ref[...],
                 preferred_element_type=jnp.float32)
    h2 = jnp.maximum(h2 + b2_ref[...], 0.0)
    # fc3
    logits = jnp.dot(h2.astype(jnp.bfloat16), w3_ref[...],
                     preferred_element_type=jnp.float32) + b3_ref[...]
    # log_softmax over features (dim=1), numerically stable, all f32.
    m = jnp.max(logits, axis=-1, keepdims=True)
    shifted = logits - m
    lse = jnp.log(jnp.sum(jnp.exp(shifted), axis=-1, keepdims=True))
    o_ref[...] = (shifted - lse).astype(o_ref.dtype)


def prepare_params(params):
    """One-time conversion from PyTorch layout ([out,in] W, [out] b) to kernel
    layout ([in,out] bf16 weights, [1,out] f32 bias rows)."""
    return {
        "w1": params["w1"].T.astype(jnp.bfloat16),   # [784, 128]
        "w2": params["w2"].T.astype(jnp.bfloat16),   # [128, 64]
        "w3": params["w3"].T.astype(jnp.bfloat16),   # [64, 10]
        "b1": params["b1"].reshape(1, -1).astype(jnp.float32),
        "b2": params["b2"].reshape(1, -1).astype(jnp.float32),
        "b3": params["b3"].reshape(1, -1).astype(jnp.float32),
    }


def digit_recognizer_forward(x, prepared, *, tile_b=256):
    """x: [B, 784] float-like. prepared: output of prepare_params()."""
    B = x.shape[0]
    x = x.astype(jnp.bfloat16)

    # Pad batch to a multiple of the tile (and of 16 for bf16 sublane packing).
    bp = ((B + 15) // 16) * 16
    tile = min(tile_b, bp)
    bp = ((bp + tile - 1) // tile) * tile
    if bp != B:
        x = jnp.pad(x, ((0, bp - B), (0, 0)))
    grid = (bp // tile,)

    const = lambda i: (0, 0)
    in_specs = [
        pl.BlockSpec((tile, IN_F), lambda i: (i, 0)),   # x tile (streams)
        pl.BlockSpec((IN_F, H1_F), const),              # w1 (resident)
        pl.BlockSpec((1, H1_F), const),                 # b1
        pl.BlockSpec((H1_F, H2_F), const),              # w2
        pl.BlockSpec((1, H2_F), const),                 # b2
        pl.BlockSpec((H2_F, OUT_F), const),             # w3
        pl.BlockSpec((1, OUT_F), const),                # b3
    ]
    out_specs = pl.BlockSpec((tile, OUT_F), lambda i: (i, 0))

    weight_bytes = 2 * (IN_F * H1_F + H1_F * H2_F + H2_F * OUT_F)
    bias_bytes = 4 * (H1_F + H2_F + OUT_F)
    cost = pl.CostEstimate(
        flops=2 * bp * (IN_F * H1_F + H1_F * H2_F + H2_F * OUT_F),
        transcendentals=bp * (OUT_F + 1),
        bytes_accessed=bp * IN_F * 2 + weight_bytes + bias_bytes + bp * OUT_F * 4,
    )

    out = pl.pallas_call(
        _mlp_kernel,
        out_shape=jax.ShapeDtypeStruct((bp, OUT_F), jnp.float32),
        grid=grid,
        in_specs=in_specs,
        out_specs=out_specs,
        compiler_params=pltpu.CompilerParams(
            dimension_semantics=("parallel",),
            vmem_limit_bytes=32 << 20,
        ),
        cost_estimate=cost,
    )(x, prepared["w1"], prepared["b1"], prepared["w2"], prepared["b2"],
      prepared["w3"], prepared["b3"])
    return out[:B] if bp != B else out


def init_params(key):
    """Deterministic init matching nn.Linear shapes (uniform +/- 1/sqrt(fan_in))."""
    sizes = [(H1_F, IN_F), (H2_F, H1_F), (OUT_F, H2_F)]
    params = {}
    for i, (out_f, in_f) in enumerate(sizes, start=1):
        key, kw, kb = jax.random.split(key, 3)
        bound = 1.0 / jnp.sqrt(in_f)
        params[f"w{i}"] = jax.random.uniform(
            kw, (out_f, in_f), jnp.float32, -bound, bound)
        params[f"b{i}"] = jax.random.uniform(
            kb, (out_f,), jnp.float32, -bound, bound)
    return params


def _reference_forward_f32(x, params):
    hp = jax.lax.Precision.HIGHEST
    h = jnp.maximum(jnp.dot(x, params["w1"].T, precision=hp) + params["b1"], 0.0)
    h = jnp.maximum(jnp.dot(h, params["w2"].T, precision=hp) + params["b2"], 0.0)
    logits = jnp.dot(h, params["w3"].T, precision=hp) + params["b3"]
    return jax.nn.log_softmax(logits, axis=1)


def _reference_forward_bf16(x, params):
    """Mirrors the kernel's bf16 MXU inputs / f32 accumulation."""
    hp = jax.lax.Precision.HIGHEST
    f32 = lambda a: a.astype(jnp.bfloat16).astype(jnp.float32)
    h = jnp.maximum(
        jnp.dot(f32(x), f32(params["w1"].T), precision=hp) + params["b1"], 0.0)
    h = jnp.maximum(
        jnp.dot(f32(h), f32(params["w2"].T), precision=hp) + params["b2"], 0.0)
    logits = jnp.dot(f32(h), f32(params["w3"].T), precision=hp) + params["b3"]
    return jax.nn.log_softmax(logits, axis=1)


if __name__ == "__main__":
    key = jax.random.PRNGKey(0)
    key, kx_small, kx_large = jax.random.split(key, 3)
    params = init_params(key)
    prepared = prepare_params(params)   # hoisted: transposes/casts done once

    # Small batch (single tile) and a larger non-multiple batch (pad + 2 tiles).
    for kx, B in ((kx_small, 8), (kx_large, 300)):
        x = jax.random.normal(kx, (B, IN_F), jnp.float32)
        out = jax.block_until_ready(digit_recognizer_forward(x, prepared))
        assert out.shape == (B, OUT_F)

        ref_bf16 = _reference_forward_bf16(x, params)
        ref_f32 = _reference_forward_f32(x, params)
        assert jnp.allclose(out, ref_bf16, atol=5e-3, rtol=5e-3), \
            f"B={B}: mismatch vs bf16-mirrored reference"
        assert jnp.allclose(out, ref_f32, atol=5e-2, rtol=5e-2), \
            f"B={B}: mismatch vs f32 reference"

    print("KERNEL_OK")
</pallas_src>

<mosaic_0001>
module attributes {stable_mosaic.version = 11 : i64} {
  func.func @_mlp_kernel(%arg0: i32, %arg1: memref<16x784xbf16, #tpu.memory_space<vmem>>, %arg2: memref<784x128xbf16, #tpu.memory_space<vmem>>, %arg3: memref<1x128xf32, #tpu.memory_space<vmem>>, %arg4: memref<128x64xbf16, #tpu.memory_space<vmem>>, %arg5: memref<1x64xf32, #tpu.memory_space<vmem>>, %arg6: memref<64x10xbf16, #tpu.memory_space<vmem>>, %arg7: memref<1x10xf32, #tpu.memory_space<vmem>>, %arg8: memref<16x10xf32, #tpu.memory_space<vmem>>) attributes {dimension_semantics = [#tpu.dimension_semantics<parallel>], iteration_bounds = array<i64: 1>, scalar_prefetch = 0 : i64, scratch_operands = 0 : i64, tpu.core_type = #tpu.core_type<tc>, window_params = [{transform_indices = @transform_0, window_bounds = array<i64: 16, 784>}, {pipeline_mode = #tpu.pipeline_mode<synchronous>, transform_indices = @transform_1, window_bounds = array<i64: 784, 128>}, {pipeline_mode = #tpu.pipeline_mode<synchronous>, transform_indices = @transform_2, window_bounds = array<i64: 1, 128>}, {pipeline_mode = #tpu.pipeline_mode<synchronous>, transform_indices = @transform_3, window_bounds = array<i64: 128, 64>}, {pipeline_mode = #tpu.pipeline_mode<synchronous>, transform_indices = @transform_4, window_bounds = array<i64: 1, 64>}, {pipeline_mode = #tpu.pipeline_mode<synchronous>, transform_indices = @transform_5, window_bounds = array<i64: 64, 10>}, {pipeline_mode = #tpu.pipeline_mode<synchronous>, transform_indices = @transform_6, window_bounds = array<i64: 1, 10>}, {transform_indices = @transform_7, window_bounds = array<i64: 16, 10>}]} {
    %c0 = arith.constant 0 : index
    %c0_0 = arith.constant 0 : index
    %0 = vector.load %arg1[%c0, %c0_0] : memref<16x784xbf16, #tpu.memory_space<vmem>>, vector<16x784xbf16>
    %c0_1 = arith.constant 0 : index
    %c0_2 = arith.constant 0 : index
    %1 = vector.load %arg2[%c0_1, %c0_2] : memref<784x128xbf16, #tpu.memory_space<vmem>>, vector<784x128xbf16>
    %cst = arith.constant dense<0.000000e+00> : vector<16x128xf32>
    %2 = tpu.matmul %0, %1, %cst {dimension_numbers = #tpu.dot_dimension_numbers<[1], [0], [0], [1], [0, 0, 1, 1], [], []>} : vector<16x784xbf16>, vector<784x128xbf16>, vector<16x128xf32> -> vector<16x128xf32>
    %c0_3 = arith.constant 0 : index
    %c0_4 = arith.constant 0 : index
    %3 = vector.load %arg3[%c0_3, %c0_4] : memref<1x128xf32, #tpu.memory_space<vmem>>, vector<1x128xf32>
    %4 = vector.broadcast %3 : vector<1x128xf32> to vector<16x128xf32>
    %5 = arith.addf %2, %4 : vector<16x128xf32>
    %cst_5 = arith.constant 0.000000e+00 : f32
    %6 = vector.broadcast %cst_5 : f32 to vector<16x128xf32>
    %7 = arith.maximumf %5, %6 : vector<16x128xf32>
    %8 = arith.truncf %7 : vector<16x128xf32> to vector<16x128xbf16>
    %c0_6 = arith.constant 0 : index
    %c0_7 = arith.constant 0 : index
    %9 = vector.load %arg4[%c0_6, %c0_7] : memref<128x64xbf16, #tpu.memory_space<vmem>>, vector<128x64xbf16>
    %cst_8 = arith.constant dense<0.000000e+00> : vector<16x64xf32>
    %10 = tpu.matmul %8, %9, %cst_8 {dimension_numbers = #tpu.dot_dimension_numbers<[1], [0], [0], [1], [0, 0, 1, 1], [], []>} : vector<16x128xbf16>, vector<128x64xbf16>, vector<16x64xf32> -> vector<16x64xf32>
    %c0_9 = arith.constant 0 : index
    %c0_10 = arith.constant 0 : index
    %11 = vector.load %arg5[%c0_9, %c0_10] : memref<1x64xf32, #tpu.memory_space<vmem>>, vector<1x64xf32>
    %12 = vector.broadcast %11 : vector<1x64xf32> to vector<16x64xf32>
    %13 = arith.addf %10, %12 : vector<16x64xf32>
    %cst_11 = arith.constant 0.000000e+00 : f32
    %14 = vector.broadcast %cst_11 : f32 to vector<16x64xf32>
    %15 = arith.maximumf %13, %14 : vector<16x64xf32>
    %16 = arith.truncf %15 : vector<16x64xf32> to vector<16x64xbf16>
    %c0_12 = arith.constant 0 : index
    %c0_13 = arith.constant 0 : index
    %17 = vector.load %arg6[%c0_12, %c0_13] : memref<64x10xbf16, #tpu.memory_space<vmem>>, vector<64x10xbf16>
    %cst_14 = arith.constant dense<0.000000e+00> : vector<16x10xf32>
    %18 = tpu.matmul %16, %17, %cst_14 {dimension_numbers = #tpu.dot_dimension_numbers<[1], [0], [0], [1], [0, 0, 1, 1], [], []>} : vector<16x64xbf16>, vector<64x10xbf16>, vector<16x10xf32> -> vector<16x10xf32>
    %c0_15 = arith.constant 0 : index
    %c0_16 = arith.constant 0 : index
    %19 = vector.load %arg7[%c0_15, %c0_16] : memref<1x10xf32, #tpu.memory_space<vmem>>, vector<1x10xf32>
    %20 = vector.broadcast %19 : vector<1x10xf32> to vector<16x10xf32>
    %21 = arith.addf %18, %20 : vector<16x10xf32>
    %cst_17 = arith.constant dense<0xFF800000> : vector<16xf32>
    %22 = vector.multi_reduction <maximumf>, %21, %cst_17 [1] : vector<16x10xf32> to vector<16xf32>
    %23 = vector.shape_cast %22 : vector<16xf32> to vector<16x1xf32>
    %24 = vector.broadcast %23 : vector<16x1xf32> to vector<16x10xf32>
    %25 = arith.subf %21, %24 : vector<16x10xf32>
    %26 = math.exp %25 : vector<16x10xf32>
    %cst_18 = arith.constant dense<0.000000e+00> : vector<16xf32>
    %27 = vector.multi_reduction <add>, %26, %cst_18 [1] : vector<16x10xf32> to vector<16xf32>
    %28 = vector.shape_cast %27 : vector<16xf32> to vector<16x1xf32>
    %29 = math.log %28 : vector<16x1xf32>
    %30 = vector.broadcast %29 : vector<16x1xf32> to vector<16x10xf32>
    %31 = arith.subf %25, %30 : vector<16x10xf32>
    %c0_19 = arith.constant 0 : index
    %c0_20 = arith.constant 0 : index
    %32 = vector.load %arg8[%c0_19, %c0_20] : memref<16x10xf32, #tpu.memory_space<vmem>>, vector<16x10xf32>
    tpu.vector_store %arg8[%c0_19, %c0_20], %31 {strides = array<i32>} : memref<16x10xf32, #tpu.memory_space<vmem>>, vector<16x10xf32>,
    return
  }
  func.func @transform_0(%arg0: i32) -> (i32, i32) {
    %c0_i32 = arith.constant 0 : i32
    %c0_i32_0 = arith.constant 0 : i32
    return %arg0, %c0_i32 : i32, i32
  }
  func.func @transform_1(%arg0: i32) -> (i32, i32) {
    %c0_i32 = arith.constant 0 : i32
    %c0_i32_0 = arith.constant 0 : i32
    %c0_i32_1 = arith.constant 0 : i32
    return %c0_i32, %c0_i32_0 : i32, i32
  }
  func.func @transform_2(%arg0: i32) -> (i32, i32) {
    %c0_i32 = arith.constant 0 : i32
    %c0_i32_0 = arith.constant 0 : i32
    %c0_i32_1 = arith.constant 0 : i32
    return %c0_i32, %c0_i32_0 : i32, i32
  }
  func.func @transform_3(%arg0: i32) -> (i32, i32) {
    %c0_i32 = arith.constant 0 : i32
    %c0_i32_0 = arith.constant 0 : i32
    %c0_i32_1 = arith.constant 0 : i32
    return %c0_i32, %c0_i32_0 : i32, i32
  }
  func.func @transform_4(%arg0: i32) -> (i32, i32) {
    %c0_i32 = arith.constant 0 : i32
    %c0_i32_0 = arith.constant 0 : i32
    %c0_i32_1 = arith.constant 0 : i32
    return %c0_i32, %c0_i32_0 : i32, i32
  }
  func.func @transform_5(%arg0: i32) -> (i32, i32) {
    %c0_i32 = arith.constant 0 : i32
    %c0_i32_0 = arith.constant 0 : i32
    %c0_i32_1 = arith.constant 0 : i32
    return %c0_i32, %c0_i32_0 : i32, i32
  }
  func.func @transform_6(%arg0: i32) -> (i32, i32) {
    %c0_i32 = arith.constant 0 : i32
    %c0_i32_0 = arith.constant 0 : i32
    %c0_i32_1 = arith.constant 0 : i32
    return %c0_i32, %c0_i32_0 : i32, i32
  }
  func.func @transform_7(%arg0: i32) -> (i32, i32) {
    %c0_i32 = arith.constant 0 : i32
    %c0_i32_0 = arith.constant 0 : i32
    return %arg0, %c0_i32 : i32, i32
  }
}

</mosaic_0001>

<bundles_post_ra>
// kernel: tpu_custom_call.1
= control target key start
LH: loop header
LB: loop body
LE: loop exit
PB: predicated region body
PF: predicated region fallthrough
CT: control target
= control target key end

     0   :  { %12 = vsyncpa [#allocation3], 0  ;;  %s1389_s0 = inlined_call_operand.vmem [shape: bf16[16,784], index: 0, kind: input, shape index: {}]   ;;  %s1390_s1 = inlined_call_operand.hbm [shape: bf16[784,128], index: 1, kind: input, shape index: {}]   ;;  %s1391_s2 = inlined_call_operand.vmem [shape: f32[1,128], index: 2, kind: input, shape index: {}]   ;;  %s1392_s3 = inlined_call_operand.vmem [shape: bf16[128,64], index: 3, kind: input, shape index: {}]   ;;  %s1393_s4 = inlined_call_operand.vmem [shape: f32[1,64], index: 4, kind: input, shape index: {}]   ;;  %s1394_s5 = inlined_call_operand.vmem [shape: bf16[64,10], index: 5, kind: input, shape index: {}]   ;;  %s1395_s6 = inlined_call_operand.vmem [shape: f32[1,10], index: 6, kind: input, shape index: {}]   ;;  %s1396_s7 = inlined_call_operand.hbm [shape: f32[16,10], index: 7, kind: output, shape index: {}]  }
   0x1   :  { %13 = vsyncpa [#allocation4], 0  ;;  %s1226_s24 = smov [#allocation2]   ;;  %s1178_s28 = scalar_lea.hbm %s1390_s1, 6272 }
   0x2   :  { %s21_s25 = sshll.u32 %s1226_s24, 4  ;;  %p1179_p0 = scmp.ne.s32.totalorder %s1390_s1, %s1178_s28  ;;  %s22_s25 = int_to_ptr.vmem [resolvable:$true] %s21_s25 }
   0x3   :  { %p1182_p1 = scmp.lt.u32.totalorder %s1178_s28, %s1390_s1 }
   0x5   :  { %p1184_p2 = pnand %p1182_p1, %p1179_p0 }
   0x7   :  { %1187 = shalt.err (!%p1184_p2)
}
   0x8   :  { %s1188_s10 = scalar_lea.vmem %s22_s25, 6272  ;;  %p1193_p4 = scmp.lt.s32.totalorder %s22_s25, %s22_s25 }
   0x9   :  { %p1189_p3 = scmp.ne.s32.totalorder %s22_s25, %s1188_s10  ;;  %p1194_p5 = scmp.lt.s32.totalorder %s1188_s10, %s1188_s10 }
   0xb   :  { %p1195_p6 = por %p1194_p5, %p1193_p4 }
   0xd   :  { %p1196_p7 = pnand %p1195_p6, %p1189_p3 }
   0xf   :  { %1199 = shalt.err (!%p1196_p7)
}
  0x10   :  { %s1227_s11 = smov 64   ;;  %s1228_s12 = smov 4  }
  0x11   :  { %27 = dma.hbm_to_vmem [thread:$0]  %s1390_s1, 6272, %s22_s25, [#allocation3], %s1227_s11, %s1227_s11, %s1228_s12  }
  0x12   :  { %1222 = dma.done.wait [#allocation3], 6272  }
  0x13   :  { %1223 = vsyncadd [#allocation3], 4294961024  ;;  %v1099_v0 = vld [vmem:[#allocation2 + $0x40] sm:$0xff]   ;;  %v1103_v4 = vld [vmem:[#allocation2 + $0x48] sm:$0xff]   ;;  %v1229_v38 = vmov 0.0   ;;  %vm1230_vm0 = vmmov 0  }
  0x14   :  { %v1100_v1 = vld [vmem:[#allocation2] sm:$0xff]   ;;  %971 = vmatprep.subr.bf16.mxu0 %v1099_v0  ;;  %v1104_v5 = vld [vmem:[#allocation2 + $0x8] sm:$0xff]   ;;  %v1107_v8 = vld [vmem:[#allocation2 + $0x50] sm:$0xff]   ;;  %vm484_vm1 = vcmask 130048   ;;  %vm809_vm2 = vcmask 523264   ;;  %vm854_vm3 = vcmask 80896  }
  0x15   :  { %v1101_v2 = vld [vmem:[#allocation2 + $0xc0] sm:$0xff]   ;;  %972 = vmatpush3.bf16.msra.mxu0 %v1100_v1  ;;  %v1105_v6 = vld [vmem:[#allocation2 + $0xc8] sm:$0xff]   ;;  %v1108_v9 = vld [vmem:[#allocation2 + $0x10] sm:$0xff]  }
  0x16   :  { %v1102_v3 = vld [vmem:[#allocation2 + $0x80] sm:$0xff]   ;;  %993 = vmatprep.subr.bf16.mxu1 %v1101_v2  ;;  %973 = vmatprep.subr.bf16.mxu0 %v1103_v4  ;;  %v1106_v7 = vld [vmem:[#allocation2 + $0x88] sm:$0xff]   ;;  %v1109_v10 = vld [vmem:[#allocation2 + $0xd0] sm:$0xff]  }
  0x17   :  { %994 = vmatpush3.bf16.msra.mxu1 %v1102_v3  ;;  %v1110_v11 = vld [vmem:[#allocation2 + $0x90] sm:$0xff]   ;;  %v1111_v12 = vld [vmem:[#allocation2 + $0x58] sm:$0xff]   ;;  %v1115_v16 = vld [vmem:[#allocation2 + $0x60] sm:$0xff]  }
  0x18   :  { %995 = vmatprep.subr.bf16.mxu1 %v1105_v6  ;;  %v1112_v13 = vld [vmem:[#allocation2 + $0x18] sm:$0xff]   ;;  %v1116_v17 = vld [vmem:[#allocation2 + $0x20] sm:$0xff]   ;;  %v1119_v20 = vld [vmem:[#allocation2 + $0x68] sm:$0xff]  }
  0x19   :  { %974 = vmatpush3.bf16.msra.mxu0 %v1104_v5  ;;  %v1113_v14 = vld [vmem:[#allocation2 + $0xd8] sm:$0xff]   ;;  %v1117_v18 = vld [vmem:[#allocation2 + $0xe0] sm:$0xff]   ;;  %v1120_v21 = vld [vmem:[#allocation2 + $0x28] sm:$0xff]  }
  0x1a   :  { %975 = vmatprep.subr.bf16.mxu0 %v1107_v8  ;;  %v1114_v15 = vld [vmem:[#allocation2 + $0x98] sm:$0xff]   ;;  %v1118_v19 = vld [vmem:[#allocation2 + $0xa0] sm:$0xff]   ;;  %v1121_v22 = vld [vmem:[#allocation2 + $0xe8] sm:$0xff]  }
  0x1b   :  { %996 = vmatpush3.bf16.msra.mxu1 %v1106_v7  ;;  %v1122_v23 = vld [vmem:[#allocation2 + $0xa8] sm:$0xff]   ;;  %v1123_v24 = vld [vmem:[#allocation2 + $0x70] sm:$0xff]   ;;  %v1127_v28 = vld [vmem:[#allocation2 + $0x78] sm:$0xff]  }
  0x1c   :  { %997 = vmatprep.subr.bf16.mxu1 %v1109_v10  ;;  %v1124_v25 = vld [vmem:[#allocation2 + $0x30] sm:$0xff]   ;;  %v1128_v29 = vld [vmem:[#allocation2 + $0x38] sm:$0xff]   ;;  %v1132_v32 = vld [vmem:[%s1389_s0 + $0x4] ss:$28 sps:$4 sm:$0xff]  }
  0x1d   :  { %976 = vmatpush3.bf16.msra.mxu0 %v1108_v9  ;;  %v1125_v26 = vld [vmem:[#allocation2 + $0xf0] sm:$0xff]   ;;  %v1129_v30 = vld [vmem:[#allocation2 + $0xf8] sm:$0xff]   ;;  %520 = vmatprep.mubr.bf16.mxu0 %v1132_v32  ;;  %v1134_v34 = vld [vmem:[#allocation2 + $0x140] sm:$0xff]  }
  0x1e   :  { %977 = vmatprep.subr.bf16.mxu0 %v1111_v12  ;;  %v1126_v27 = vld [vmem:[#allocation2 + $0xb0] sm:$0xff]   ;;  %v1130_v31 = vld [vmem:[%s1389_s0] ss:$28 sps:$4 sm:$0xff]   ;;  %v1135_v35 = vld [vmem:[%s1389_s0 + $0x8] ss:$28 sps:$4 sm:$0xff]  }
  0x1f   :  { %998 = vmatpush3.bf16.msra.mxu1 %v1110_v11  ;;  %v1133_v33 = vld [vmem:[#allocation2 + $0xb8] sm:$0xff]   ;;  %v1137_v36 = vld [vmem:[%s1389_s0 + $0xc] ss:$28 sps:$4 sm:$0xff]   ;;  %v1138_v37 = vld [vmem:[#allocation2 + $0x100] sm:$0xff]  }
  0x20   :  { %999 = vmatprep.subr.bf16.mxu1 %v1113_v14  ;;  %561 = vmatprep.mubr.bf16.mxu1 %v1137_v36  ;;  %v1139_v39 = vld [vmem:[#allocation2 + $0x148] sm:$0xff]   ;;  %v1141_v41 = vld [vmem:[#allocation2 + $0x150] sm:$0xff]   ;;  %v1143_v43 = vld [vmem:[#allocation2 + $0x158] sm:$0xff]  }
  0x21   :  { %978 = vmatpush3.bf16.msra.mxu0 %v1112_v13  ;;  %v1140_v40 = vld [vmem:[#allocation2 + $0x108] sm:$0xff]   ;;  %v1142_v42 = vld [vmem:[#allocation2 + $0x110] sm:$0xff]   ;;  %v1144_v44 = vld [vmem:[#allocation2 + $0x118] sm:$0xff]  }
  0x22   :  { %979 = vmatprep.subr.bf16.mxu0 %v1115_v16  ;;  %v1145_v45 = vld [vmem:[#allocation2 + $0x160] sm:$0xff]   ;;  %v1147_v47 = vld [vmem:[#allocation2 + $0x168] sm:$0xff]   ;;  %v1156_v50 = vld [vmem:[%s1389_s0 + $0x14] ss:$28 sps:$4 sm:$0xff]  }
  0x23   :  { %1000 = vmatpush3.bf16.msra.mxu1 %v1114_v15  ;;  %v1146_v46 = vld [vmem:[#allocation2 + $0x120] sm:$0xff]   ;;  %v1148_v49 = vld [vmem:[#allocation2 + $0x128] sm:$0xff]   ;;  %v1149_v51 = vld [vmem:[#allocation2 + $0x170] sm:$0xff]  }
  0x24   :  { %1001 = vmatprep.subr.bf16.mxu1 %v1117_v18  ;;  %v1153_v48 = vld [vmem:[#allocation2 + $0x180] sm:$0xff]   ;;  %v1157_v52 = vld [vmem:[%s1389_s0 + $0x18] ss:$28 sps:$4 sm:$0xff]   ;;  %v1154_v56 = vld [vmem:[%s1389_s0 + $0x10] ss:$28 sps:$4 sm:$0xff]  }
  0x25   :  { %980 = vmatpush3.bf16.msra.mxu0 %v1116_v17  ;;  %v1150_v53 = vld [vmem:[#allocation2 + $0x130] sm:$0xff]   ;;  %v1151_v54 = vld [vmem:[#allocation2 + $0x178] sm:$0xff]   ;;  %v1158_v57 = vld [vmem:[%s1392_s3] sm:$0xff]  }
  0x26   :  { %981 = vmatprep.subr.bf16.mxu0 %v1119_v20  ;;  %v1152_v55 = vld [vmem:[#allocation2 + $0x138] sm:$0xff]   ;;  %v1159_v58 = vld [vmem:[%s1392_s3 + $0x8] sm:$0xff]   ;;  %v1160_v59 = vld [vmem:[%s1392_s3 + $0x10] sm:$0xff]  }
  0x27   :  { %1002 = vmatpush3.bf16.msra.mxu1 %v1118_v19  ;;  %v1161_v60 = vld [vmem:[%s1392_s3 + $0x18] sm:$0xff]   ;;  %v1162_v61 = vld [vmem:[%s1392_s3 + $0x20] sm:$0xff]   ;;  %v1163_v62 = vld [vmem:[%s1392_s3 + $0x28] sm:$0xff]  }
  0x28   :  { %1003 = vmatprep.subr.bf16.mxu1 %v1121_v22  ;;  %v1164_v63 = vld [vmem:[%s1392_s3 + $0x30] sm:$0xff]   ;;  %v1165_v0 = vld [vmem:[%s1392_s3 + $0x38] sm:$0xff]   ;;  %v1166_v1 = vld [vmem:[%s1394_s5] sm:$0xff]  }
  0x29   :  { %982 = vmatpush3.bf16.msra.mxu0 %v1120_v21  ;;  %v1167_v2 = vld [vmem:[%s1394_s5 + $0x8] sm:$0xff]   ;;  %v898_v4 = vld [vmem:[%s1391_s2] ss:$0 sm:$0xff] }
  0x2a   :  { %983 = vmatprep.subr.bf16.mxu0 %v1123_v24 }
  0x2b   :  { %1004 = vmatpush3.bf16.msra.mxu1 %v1122_v23 }
  0x2c   :  { %1005 = vmatprep.subr.bf16.mxu1 %v1125_v26 }
  0x2d   :  { %984 = vmatpush3.bf16.msra.mxu0 %v1124_v25 }
  0x2e   :  { %985 = vmatprep.subr.bf16.mxu0 %v1127_v28 }
  0x2f   :  { %1006 = vmatpush3.bf16.msra.mxu1 %v1126_v27 }
  0x30   :  { %1007 = vmatprep.subr.bf16.mxu1 %v1129_v30 }
  0x31   :  { %986 = vmatpush3.bf16.msra.mxu0 %v1128_v29 }
  0x32   :  { %1015 = vmatprep.subr.bf16.mxu0 %v1134_v34 }
  0x33   :  { %1008 = vmatpush3.bf16.msra.mxu1 %v1133_v33 }
  0x34   :  { %521 = vmatmul.mubr.bf16.vlgmr.msra.gmra.mrb[0].mxu0 %v1130_v31  ;;  %1053 = vmatprep.subr.bf16.mxu1 %v1229_v38 }
  0x35   :  { %1016 = vmatpush3.bf16.msra.mxu0 %v1138_v37  ;;  %602 = vmatprep.mubr.bf16.mxu0 %v1156_v50  ;;  %v1168_v37 = vld [vmem:[%s1394_s5 + $0x10] sm:$0xff]  }
  0x36   :  { %562 = vmatmul.mubr.bf16.vlgmr.msra.gmra.mrb[0].mxu1 %v1135_v35  ;;  %1017 = vmatprep.subr.bf16.mxu0 %v1139_v39  ;;  %v1169_v39 = vld [vmem:[%s1394_s5 + $0x18] sm:$0xff]  }
  0x37   :  { %1055 = vmatprep.mubr.msk.bf16.mxu1 %vm1230_vm0, %v1229_v38  ;;  %1054 = vmatpush3.bf16.msra.mxu1 %v1153_v48 }
  0x38   :  { %1059 = vmatprep.subr.bf16.mxu1 %v1229_v38 }
  0x39   :  { %1018 = vmatpush3.bf16.msra.mxu0 %v1140_v40  ;;  %v956_v40 = vld [vmem:[%s1393_s4] ss:$0 sm:$0xff]  ;;  %s1231_s4 = smov [#allocation5]  }
  0x3a   :  { %1019 = vmatprep.subr.bf16.mxu0 %v1141_v41  ;;  %s886_s5 = sshll.u32 %s1231_s4, 4  ;;  %s887_s5 = int_to_ptr.vmem [resolvable:$true] %s886_s5 }
  0x3b   :  { %p1205_p9 = scmp.lt.s32.totalorder %s887_s5, %s887_s5 }
  0x3d   :  { %1020 = vmatpush3.bf16.msra.mxu0 %v1142_v42 }
  0x3e   :  { %1021 = vmatprep.subr.bf16.mxu0 %v1143_v43  ;;  %1056 = vmatmul.mubr.msk.bf16.vlgmr.msra.gmra.mrb[4].mxu1 %vm484_vm1, %v1157_v52 }
  0x3f   :  { %1075 = vmatprep.mubr.msk.bf16.mxu1 %vm1230_vm0, %v1229_v38  ;;  %1060 = vmatpush3.bf16.msra.mxu1 %v1158_v57 }
  0x40   :  { %1061 = vmatprep.subr.bf16.mxu1 %v1229_v38 }
  0x41   :  { %1022 = vmatpush3.bf16.msra.mxu0 %v1144_v44 }
  0x42   :  { %1023 = vmatprep.subr.bf16.mxu0 %v1145_v45 }
  0x43   :  { %1062 = vmatpush3.bf16.msra.mxu1 %v1159_v58 }
  0x44   :  { %1063 = vmatprep.subr.bf16.mxu1 %v1229_v38 }
  0x45   :  { %1024 = vmatpush3.bf16.msra.mxu0 %v1146_v46 }
  0x46   :  { %1025 = vmatprep.subr.bf16.mxu0 %v1147_v47 }
  0x47   :  { %1064 = vmatpush3.bf16.msra.mxu1 %v1160_v59 }
  0x48   :  { %1065 = vmatprep.subr.bf16.mxu1 %v1229_v38 }
  0x49   :  { %1026 = vmatpush3.bf16.msra.mxu0 %v1148_v49 }
  0x4a   :  { %1027 = vmatprep.subr.bf16.mxu0 %v1149_v51 }
  0x4b   :  { %1066 = vmatpush3.bf16.msra.mxu1 %v1161_v60 }
  0x4c   :  { %1067 = vmatprep.subr.bf16.mxu1 %v1229_v38 }
  0x4d   :  { %1028 = vmatpush3.bf16.msra.mxu0 %v1150_v53 }
  0x4e   :  { %1029 = vmatprep.subr.bf16.mxu0 %v1151_v54 }
  0x4f   :  { %1068 = vmatpush3.bf16.msra.mxu1 %v1162_v61 }
  0x50   :  { %1069 = vmatprep.subr.bf16.mxu1 %v1229_v38 }
  0x51   :  { %1030 = vmatpush3.bf16.msra.mxu0 %v1152_v55 }
  0x52   :  { %1079 = vmatprep.subr.bf16.mxu0 %v1229_v38 }
  0x53   :  { %1070 = vmatpush3.bf16.msra.mxu1 %v1163_v62 }
  0x54   :  { %603 = vmatmul.mubr.bf16.vlgmr.msra.gmra.mrb[4].mxu0 %v1154_v56  ;;  %1071 = vmatprep.subr.bf16.mxu1 %v1229_v38 }
  0x55   :  { %1087 = vmatprep.mubr.msk.bf16.mxu0 %vm1230_vm0, %v1229_v38  ;;  %1080 = vmatpush3.bf16.msra.mxu0 %v1166_v1 }
  0x56   :  { %1081 = vmatprep.subr.bf16.mxu0 %v1229_v38 }
  0x57   :  { %1072 = vmatpush3.bf16.msra.mxu1 %v1164_v63 }
  0x58   :  { %1073 = vmatprep.subr.bf16.mxu1 %v1229_v38 }
  0x59   :  { %1082 = vmatpush3.bf16.msra.mxu0 %v1167_v2 }
  0x5a   :  { %1083 = vmatprep.subr.bf16.mxu0 %v1229_v38 }
  0x5b   :  { %1074 = vmatpush3.bf16.msra.mxu1 %v1165_v0 }
  0x5d   :  { %1084 = vmatpush3.bf16.msra.mxu0 %v1168_v37 }
  0x5e   :  { %1085 = vmatprep.subr.bf16.mxu0 %v1229_v38  ;;  %v965_v38 = vld [vmem:[%s1395_s6] ss:$0 sm:$0xff]  ;;  %s1200_s6 = scalar_lea.vmem %s887_s5, 256 }
  0x5f   :  { %p1201_p8 = scmp.ne.s32.totalorder %s887_s5, %s1200_s6  ;;  %p1206_p10 = scmp.lt.s32.totalorder %s1200_s6, %s1200_s6 }
  0x61   :  { %1086 = vmatpush3.bf16.msra.mxu0 %v1169_v39  ;;  %p1207_p11 = por %p1206_p10, %p1205_p9 }
  0x63   :  { %p1208_p12 = pnand %p1207_p11, %p1201_p8 }
 0x107   :  { %v987_v3 = vpop.f32.mrb[0].mxu0 }
 0x108   :  { %v988_v5 = vpop.f32.mrb[1].mxu0 }
 0x109   :  { %v989_v6 = vadd.f32 %v988_v5, %v987_v3  ;;  %v990_v7 = vpop.f32.mrb[2].mxu0  ;;  %v1009_v8 = vpop.f32.mrb[0].mxu1 }
 0x10a   :  { %v991_v9 = vpop.f32.mrb[3].mxu0  ;;  %v1010_v12 = vpop.f32.mrb[1].mxu1 }
 0x10b   :  { %v523_v10 = vadd.f32 %v989_v6, %v898_v4  ;;  %v992_v11 = vadd.f32 %v991_v9, %v990_v7  ;;  %v1011_v13 = vadd.f32 %v1010_v12, %v1009_v8  ;;  %v1012_v14 = vpop.f32.mrb[2].mxu1 }
 0x10c   :  { %v1013_v16 = vpop.f32.mrb[3].mxu1 }
 0x10d   :  { %v526_v15 = vadd.f32 %v992_v11, %v898_v4  ;;  %v564_v17 = vadd.f32 %v1011_v13, %v523_v10  ;;  %v1014_v18 = vadd.f32 %v1013_v16, %v1012_v14 }
 0x10f   :  { %v567_v19 = vadd.f32 %v1014_v18, %v526_v15 }
 0x111   :  { %v645_v20 = vpop.f32.mrb[4].mxu1 }
 0x112   :  { %v1057_v21 = vpop.f32.mrb[5].mxu1 }
 0x113   :  { %v648_v22 = vpop.f32.mrb[6].mxu1 }
 0x114   :  { %v1058_v23 = vpop.f32.mrb[7].mxu1 }
 0x127   :  { %v1031_v24 = vpop.f32.mrb[4].mxu0 }
 0x128   :  { %v1032_v25 = vpop.f32.mrb[5].mxu0 }
 0x129   :  { %v1033_v26 = vadd.f32 %v1032_v25, %v1031_v24  ;;  %v1034_v27 = vpop.f32.mrb[6].mxu0 }
 0x12a   :  { %v1035_v28 = vpop.f32.mrb[7].mxu0 }
 0x12b   :  { %v605_v29 = vadd.f32 %v1033_v26, %v564_v17  ;;  %v1036_v30 = vadd.f32 %v1035_v28, %v1034_v27 }
 0x12d   :  { %v646_v31 = vadd.f32 %v645_v20, %v605_v29  ;;  %v608_v32 = vadd.f32 %v1036_v30, %v567_v19 }
 0x12f   :  { %v649_v33 = vadd.f32 %v648_v22, %v608_v32  ;;  %v652_v34 = vmax.f32 %v646_v31, 0.0 }
 0x131   :  { %v653_v35 = vmax.f32 %v649_v33, 0.0 }
 0x133   :  { %v654_v36 = vpack.c.bf16 %v653_v35, %v652_v34 }
 0x135   :  { %1076 = vmatmul.mubr.bf16.vlgmr.msra.gmra.mrb[8].mxu1 %v654_v36 }
 0x208   :  { %v760_v41 = vpop.f32.mrb[8].mxu1 }
 0x209   :  { %v761_v42 = vadd.f32 %v956_v40, %v760_v41  ;;  %v1077_v43 = vpop.f32.mrb[9].mxu1 }
 0x20a   :  { %v763_v44 = vpop.f32.mrb[10].mxu1 }
 0x20b   :  { %v764_v45 = vadd.f32 %v956_v40, %v763_v44  ;;  %v1078_v46 = vpop.f32.mrb[11].mxu1  ;;  %v767_v47 = vmax.f32 %v761_v42, 0.0 }
 0x20d   :  { %v768_v48 = vmax.f32 %v764_v45, 0.0 }
 0x20f   :  { %v769_v49 = vpack.c.bf16 %v768_v48, %v767_v47 }
 0x211   :  { %1088 = vmatmul.mubr.msk.bf16.vlgmr.msra.gmra.mrb[8].mxu0 %vm809_vm2, %v769_v49 }
 0x2e4   :  { %v847_v50 = vpop.f32.mrb[8].mxu0 }
 0x2e5   :  { %v848_v51 = vadd.f32 %v965_v38, %v847_v50  ;;  %v1089_v52 = vpop.f32.mrb[9].mxu0 }
 0x2e6   :  { %v850_v53 = vpop.f32.mrb[10].mxu0 }
 0x2e7   :  { %v851_v54 = vadd.f32 %v965_v38, %v850_v53  ;;  %v1090_v55 = vpop.f32.mrb[11].mxu0  ;;  %v855_v56 = vsel %vm854_vm3, %v848_v51, -inf }
 0x2e8   :  { %856 = vmax.xlane.f32.xlu0 %v855_v56 }
 0x2e9   :  { %v858_v57 = vsel %vm854_vm3, %v851_v54, -inf }
 0x2ec   :  { %859 = vmax.xlane.f32.xlu0 %v858_v57 }
 0x375   :  { %v857_v58 = vpop.xlane.xlu0 %856 }
 0x376   :  { %v861_v59 = vsub.f32 %v848_v51, %v857_v58 }
 0x378   :  { %v863_v60 = vmul.f32 1.442695, %v861_v59 }
 0x379   :  { %v860_v61 = vpop.xlane.xlu0 %859 }
 0x37a   :  { %1170 = vpow2.f32 %v863_v60  ;;  %v862_v62 = vsub.f32 %v851_v54, %v860_v61 }
 0x37c   :  { %v865_v63 = vmul.f32 1.442695, %v862_v62 }
 0x37e   :  { %1172 = vpow2.f32 %v865_v63 }
 0x384   :  { %v1171_v0 = vpop.eup %1170 }
 0x385   :  { %v867_v1 = vsel %vm854_vm3, %v1171_v0, 0.0 }
 0x386   :  { %868 = vadd.xlane.f32.xlu1 %v867_v1 }
 0x388   :  { %v1173_v2 = vpop.eup %1172 }
 0x389   :  { %v870_v3 = vsel %vm854_vm3, %v1173_v2, 0.0 }
 0x38a   :  { %871 = vadd.xlane.f32.xlu1 %v870_v3 }
 0x413   :  { %v869_v4 = vpop.xlane.xlu1 %868 }
 0x414   :  { %1174 = vlog2.f32 %v869_v4 }
 0x417   :  { %v872_v5 = vpop.xlane.xlu1 %871 }
 0x418   :  { %1176 = vlog2.f32 %v872_v5 }
 0x41e   :  { %v1175_v6 = vpop.eup %1174 }
 0x41f   :  { %v874_v7 = vmul.f32 0.6931472, %v1175_v6 }
 0x421   :  { %v877_v8 = vsub.f32 %v861_v59, %v874_v7 }
 0x422   :  { %v1177_v9 = vpop.eup %1176 }
 0x423   :  { %879 = vst.msk [vmem:[#allocation5] sm:$0xff] %vm854_vm3, %v877_v8  ;;  %v876_v10 = vmul.f32 0.6931472, %v1177_v9 }
 0x425   :  { %v878_v11 = vsub.f32 %v862_v62, %v876_v10 }
 0x427   :  { %880 = vst.msk [vmem:[#allocation5 + $0x8] sm:$0xff] %vm854_vm3, %v878_v11 }
 0x428   :  { %1211 = shalt.err (!%p1208_p12)
}
 0x429   :  { %s1212_s9 = scalar_lea.hbm %s1396_s7, 256 }
 0x42a   :  { %p1213_p13 = scmp.ne.s32.totalorder %s1396_s7, %s1212_s9  ;;  %p1216_p0 = scmp.lt.u32.totalorder %s1212_s9, %s1396_s7 }
 0x42c   :  { %p1218_p1 = pnand %p1216_p0, %p1213_p13 }
 0x42e   :  { %1221 = shalt.err (!%p1218_p1)
}
 0x42f   :  { %s1232_s14 = smov 128   ;;  %s1233_s1 = smov 8  }
 0x430   :  { %892 = dma.vmem_to_hbm [thread:$0]  %s887_s5, 256, %s1396_s7, [#allocation4], %s1232_s14, %s1232_s14, %s1233_s1  }
 0x431   :  { %1224 = dma.done.wait [#allocation4], 256  }
 0x432   :  { %1225 = vsyncadd [#allocation4], 4294967040 }
 0x433   :  { %896 = vsyncpa [#allocation3], 1 }
 0x434   :  { %897 = vsyncpa [#allocation4], 1 }

</bundles_post_ra>
